<compile_context>
chip_gen: v5e
topology: v5e:2x2
jax: 0.10.0
libtpu: 0.0.40
codegen_flags: <defaults>
</compile_context>

<pallas_src>
import functools
import math

import jax
import jax.numpy as jnp
from jax.experimental import pallas as pl
from jax.experimental.pallas import tpu as pltpu

_VMEM_LIMIT = 32 * 1024 * 1024  # modest explicit scoped-VMEM budget, safe on v5e/v6e/v7x


def _round_up(x, m):
    return (x + m - 1) // m * m


def _pick_tile(dim, cap, align):
    """Largest tile <= cap that is a multiple of `align` and divides `dim`.
    Falls back to the full dim (always legal for a BlockSpec)."""
    if dim <= cap:
        return dim
    t = (cap // align) * align
    while t >= align:
        if dim % t == 0:
            return t
        t -= align
    return dim


# ----------------------------------------------------------------------------
# Tiled matmul + bias (+ optional relu) — used for fused QKV projection and fc1
# ----------------------------------------------------------------------------

def _matmul_bias_kernel(x_ref, w_ref, b_ref, o_ref, acc_ref, *, activation):
    @pl.when(pl.program_id(2) == 0)
    def _():
        acc_ref[...] = jnp.zeros_like(acc_ref)

    acc_ref[...] += jnp.dot(x_ref[...], w_ref[...],
                            preferred_element_type=jnp.float32)

    @pl.when(pl.program_id(2) == pl.num_programs(2) - 1)
    def _():
        y = acc_ref[...] + b_ref[...]
        if activation == "relu":
            y = jnp.maximum(y, 0.0)
        o_ref[...] = y.astype(o_ref.dtype)


def pallas_matmul_bias(x, w, b, activation=None, tm_cap=256, tn_cap=512, tk_cap=512):
    M, K = x.shape
    N = w.shape[1]
    tm = _pick_tile(M, tm_cap, 8)
    tn = _pick_tile(N, tn_cap, 128)
    tk = _pick_tile(K, tk_cap, 128)
    grid = (M // tm, N // tn, K // tk)
    return pl.pallas_call(
        functools.partial(_matmul_bias_kernel, activation=activation),
        grid=grid,
        in_specs=[
            pl.BlockSpec((tm, tk), lambda i, j, k: (i, k)),
            pl.BlockSpec((tk, tn), lambda i, j, k: (k, j)),
            pl.BlockSpec((1, tn), lambda i, j, k: (0, j)),
        ],
        out_specs=pl.BlockSpec((tm, tn), lambda i, j, k: (i, j)),
        out_shape=jax.ShapeDtypeStruct((M, N), jnp.bfloat16),
        scratch_shapes=[pltpu.VMEM((tm, tn), jnp.float32)],
        compiler_params=pltpu.CompilerParams(
            dimension_semantics=("parallel", "parallel", "arbitrary"),
            vmem_limit_bytes=_VMEM_LIMIT),
    )(x, w, b.reshape(1, N))


# ----------------------------------------------------------------------------
# Tiled matmul + bias + residual + LayerNorm fused epilogue (out_proj, fc2)
# Output width = full C so the per-row norm can run in the last-K epilogue.
# ----------------------------------------------------------------------------

def _matmul_bias_add_ln_kernel(x_ref, w_ref, b_ref, r_ref, g_ref, beta_ref,
                               o_ref, acc_ref, *, eps):
    @pl.when(pl.program_id(1) == 0)
    def _():
        acc_ref[...] = jnp.zeros_like(acc_ref)

    acc_ref[...] += jnp.dot(x_ref[...], w_ref[...],
                            preferred_element_type=jnp.float32)

    @pl.when(pl.program_id(1) == pl.num_programs(1) - 1)
    def _():
        y = acc_ref[...] + b_ref[...] + r_ref[...].astype(jnp.float32)
        mean = jnp.mean(y, axis=-1, keepdims=True)
        yc = y - mean
        var = jnp.mean(yc * yc, axis=-1, keepdims=True)
        yn = yc * jax.lax.rsqrt(var + eps)
        o_ref[...] = (yn * g_ref[...] + beta_ref[...]).astype(o_ref.dtype)


def pallas_matmul_bias_add_ln(x, w, b, residual, gamma, beta, eps=1e-5,
                              tm_cap=256, tk_cap=512):
    M, K = x.shape
    N = w.shape[1]
    tm = _pick_tile(M, tm_cap, 8)
    tk = _pick_tile(K, tk_cap, 128)
    grid = (M // tm, K // tk)
    return pl.pallas_call(
        functools.partial(_matmul_bias_add_ln_kernel, eps=eps),
        grid=grid,
        in_specs=[
            pl.BlockSpec((tm, tk), lambda i, k: (i, k)),
            pl.BlockSpec((tk, N), lambda i, k: (k, 0)),
            pl.BlockSpec((1, N), lambda i, k: (0, 0)),
            pl.BlockSpec((tm, N), lambda i, k: (i, 0)),
            pl.BlockSpec((1, N), lambda i, k: (0, 0)),
            pl.BlockSpec((1, N), lambda i, k: (0, 0)),
        ],
        out_specs=pl.BlockSpec((tm, N), lambda i, k: (i, 0)),
        out_shape=jax.ShapeDtypeStruct((M, N), jnp.bfloat16),
        scratch_shapes=[pltpu.VMEM((tm, N), jnp.float32)],
        compiler_params=pltpu.CompilerParams(
            dimension_semantics=("parallel", "arbitrary"),
            vmem_limit_bytes=_VMEM_LIMIT),
    )(x, w, b.reshape(1, N), residual, gamma.reshape(1, N), beta.reshape(1, N))


# ----------------------------------------------------------------------------
# Flash-style attention: grid (B*H, q_tiles, kv_tiles), online softmax
# ----------------------------------------------------------------------------

def _flash_attn_kernel(q_ref, k_ref, v_ref, bias_ref, o_ref, m_sc, l_sc, acc_sc):
    ki = pl.program_id(2)

    @pl.when(ki == 0)
    def _():
        m_sc[...] = jnp.full_like(m_sc, -1e30)
        l_sc[...] = jnp.zeros_like(l_sc)
        acc_sc[...] = jnp.zeros_like(acc_sc)

    # bf16 operands on the MXU, f32 accumulation. q is pre-scaled (scale folded
    # into the Q projection weight at init time).
    s = jnp.einsum("bqd,bkd->bqk", q_ref[...], k_ref[...],
                   preferred_element_type=jnp.float32)
    s = s + bias_ref[...]                               # finite -1e30 key-padding bias

    m_prev = m_sc[...]
    m_new = jnp.maximum(m_prev, jnp.max(s, axis=-1, keepdims=True))
    alpha = jnp.exp(m_prev - m_new)
    p = jnp.exp(s - m_new)
    l_sc[...] = alpha * l_sc[...] + jnp.sum(p, axis=-1, keepdims=True)
    acc_sc[...] = alpha * acc_sc[...] + jnp.einsum(
        "bqk,bkd->bqd", p.astype(v_ref.dtype), v_ref[...],
        preferred_element_type=jnp.float32)
    m_sc[...] = m_new

    @pl.when(ki == pl.num_programs(2) - 1)
    def _():
        inv_l = pl.reciprocal(l_sc[...], approx=True)
        o_ref[...] = (acc_sc[...] * inv_l).astype(o_ref.dtype)


def pallas_flash_attention(q, k, v, key_bias):
    BH, T, hd = q.shape
    tq = _pick_tile(T, 128, 8)
    tkv = _pick_tile(T, 128, 128)
    grid = (BH, T // tq, T // tkv)
    return pl.pallas_call(
        _flash_attn_kernel,
        grid=grid,
        in_specs=[
            pl.BlockSpec((1, tq, hd), lambda b, qi, ki: (b, qi, 0)),
            pl.BlockSpec((1, tkv, hd), lambda b, qi, ki: (b, ki, 0)),
            pl.BlockSpec((1, tkv, hd), lambda b, qi, ki: (b, ki, 0)),
            pl.BlockSpec((1, 1, tkv), lambda b, qi, ki: (b, 0, ki)),
        ],
        out_specs=pl.BlockSpec((1, tq, hd), lambda b, qi, ki: (b, qi, 0)),
        out_shape=jax.ShapeDtypeStruct((BH, T, hd), jnp.bfloat16),
        scratch_shapes=[
            pltpu.VMEM((1, tq, 1), jnp.float32),
            pltpu.VMEM((1, tq, 1), jnp.float32),
            pltpu.VMEM((1, tq, hd), jnp.float32),
        ],
        compiler_params=pltpu.CompilerParams(
            dimension_semantics=("parallel", "parallel", "arbitrary"),
            vmem_limit_bytes=_VMEM_LIMIT),
    )(q, k, v, key_bias)


# ----------------------------------------------------------------------------
# Embedding combine: x = (tok + pos + seg) * keep_mask   (tiled over rows)
# ----------------------------------------------------------------------------

def _embed_combine_kernel(tok_ref, pos_ref, seg_ref, keep_ref, o_ref):
    x = tok_ref[...] + pos_ref[...] + seg_ref[...]
    o_ref[...] = (x * keep_ref[...]).astype(o_ref.dtype)


def pallas_embed_combine(tok, pos, seg, keep):
    M, C = tok.shape
    tm = _pick_tile(M, 512, 8)
    return pl.pallas_call(
        _embed_combine_kernel,
        grid=(M // tm,),
        in_specs=[
            pl.BlockSpec((tm, C), lambda i: (i, 0)),
            pl.BlockSpec((tm, C), lambda i: (i, 0)),
            pl.BlockSpec((tm, C), lambda i: (i, 0)),
            pl.BlockSpec((tm, 1), lambda i: (i, 0)),
        ],
        out_specs=pl.BlockSpec((tm, C), lambda i: (i, 0)),
        out_shape=jax.ShapeDtypeStruct((M, C), jnp.bfloat16),
        compiler_params=pltpu.CompilerParams(
            dimension_semantics=("parallel",),
            vmem_limit_bytes=_VMEM_LIMIT),
    )(tok, pos, seg, keep)


# ----------------------------------------------------------------------------
# Parameter init (deterministic, BERT-style: weights ~ N(0, 0.02), biases 0)
# ----------------------------------------------------------------------------

def init_params(key, cfg):
    C = cfg["embedding_dim"]
    F = cfg["ffn_dim"]
    V = cfg["vocab_size"]
    H = cfg["num_heads"]
    hd = C // H
    pad = cfg["padding_idx"]
    inv_sqrt_hd = 1.0 / math.sqrt(hd)

    def normal(k, shape, std=0.02):
        return std * jax.random.normal(k, shape, dtype=jnp.float32)

    keys = jax.random.split(key, 3 + cfg["num_layers"])

    embed_tokens = normal(keys[0], (V, C)).at[pad].set(0.0)
    n_pos = cfg["max_seq_len"] + pad + 1          # learned positional embedding table
    embed_positions = normal(keys[1], (n_pos, C)).at[pad].set(0.0)
    segment_embeddings = normal(keys[2], (cfg["num_segments"], C))

    layers = []
    for li in range(cfg["num_layers"]):
        lk = jax.random.split(keys[3 + li], 6)
        # Fused QKV weight; the 1/sqrt(head_dim) attention scale is folded into the
        # Q projection (the Q bias is zero, so no bias scaling is needed here).
        q_w = normal(lk[0], (C, C)) * inv_sqrt_hd
        k_w = normal(lk[1], (C, C))
        v_w = normal(lk[2], (C, C))
        qkv_w = jnp.concatenate([q_w, k_w, v_w], axis=1).astype(jnp.bfloat16)
        layers.append(dict(
            qkv_w=qkv_w, qkv_b=jnp.zeros((3 * C,), jnp.float32),
            out_w=normal(lk[3], (C, C)).astype(jnp.bfloat16),
            out_b=jnp.zeros((C,), jnp.float32),
            ln1_g=jnp.ones((C,), jnp.float32), ln1_b=jnp.zeros((C,), jnp.float32),
            fc1_w=normal(lk[4], (C, F)).astype(jnp.bfloat16),
            fc1_b=jnp.zeros((F,), jnp.float32),
            fc2_w=normal(lk[5], (F, C)).astype(jnp.bfloat16),
            fc2_b=jnp.zeros((C,), jnp.float32),
            ln2_g=jnp.ones((C,), jnp.float32), ln2_b=jnp.zeros((C,), jnp.float32),
        ))

    return dict(
        embed_tokens=embed_tokens,
        embed_positions=embed_positions,
        segment_embeddings=segment_embeddings,
        layers=layers,
    )


# ----------------------------------------------------------------------------
# Forward pass (mirrors MaskedTransformerSentenceEncoder.forward, eval mode)
# ----------------------------------------------------------------------------

def encoder_forward(params, tokens, segment_labels, cfg, last_state_only=False):
    B, T = tokens.shape
    C = cfg["embedding_dim"]
    H = cfg["num_heads"]
    hd = C // H
    pad_idx = cfg["padding_idx"]

    # Pad the sequence axis to a tile-friendly length; extra positions are treated
    # as padding tokens (masked everywhere, dropped at the end).
    T_pad = _round_up(T, 8) if T <= 128 else _round_up(T, 128)
    if T_pad != T:
        tokens = jnp.pad(tokens, ((0, 0), (0, T_pad - T)), constant_values=pad_idx)
        segment_labels = jnp.pad(segment_labels, ((0, 0), (0, T_pad - T)))
    M = B * T_pad

    padding_mask = (tokens == pad_idx)                                    # B x T_pad

    # --- embeddings (gathers are plain-JAX glue) ---
    tok_emb = jnp.take(params["embed_tokens"], tokens, axis=0)            # B,T_pad,C
    nonpad = (~padding_mask).astype(jnp.int32)
    positions = jnp.cumsum(nonpad, axis=1) * nonpad + pad_idx             # make_positions
    pos_emb = jnp.take(params["embed_positions"], positions, axis=0)
    seg_emb = jnp.take(params["segment_embeddings"], segment_labels, axis=0)

    keep = (~padding_mask).astype(jnp.float32).reshape(M, 1)
    x = pallas_embed_combine(tok_emb.reshape(M, C), pos_emb.reshape(M, C),
                             seg_emb.reshape(M, C), keep)                 # (M, C) bf16

    # additive key-padding bias for attention (finite, avoids -inf NaN pitfalls)
    key_bias = jnp.where(padding_mask, -1e30, 0.0).astype(jnp.float32)    # B,T_pad
    key_bias = jnp.broadcast_to(key_bias[:, None, None, :], (B, H, 1, T_pad))
    key_bias = key_bias.reshape(B * H, 1, T_pad)

    inner = [] if last_state_only else [x]

    def split_heads(t):  # (B, T_pad, H, hd) -> (B*H, T_pad, hd)
        return t.transpose(0, 2, 1, 3).reshape(B * H, T_pad, hd)

    for lp in params["layers"]:
        # --- self-attention block (post-norm) ---
        residual = x
        qkv = pallas_matmul_bias(x, lp["qkv_w"], lp["qkv_b"])             # (M, 3C)
        qkv = qkv.reshape(B, T_pad, 3, H, hd)
        q = split_heads(qkv[:, :, 0])
        k = split_heads(qkv[:, :, 1])
        v = split_heads(qkv[:, :, 2])
        attn = pallas_flash_attention(q, k, v, key_bias)                  # (B*H,T_pad,hd)
        attn = attn.reshape(B, H, T_pad, hd).transpose(0, 2, 1, 3).reshape(M, C)
        x = pallas_matmul_bias_add_ln(attn, lp["out_w"], lp["out_b"],
                                      residual, lp["ln1_g"], lp["ln1_b"])

        # --- feed-forward block (post-norm) ---
        residual = x
        h = pallas_matmul_bias(x, lp["fc1_w"], lp["fc1_b"], activation="relu")
        x = pallas_matmul_bias_add_ln(h, lp["fc2_w"], lp["fc2_b"],
                                      residual, lp["ln2_g"], lp["ln2_b"])

        if not last_state_only:
            inner.append(x)

    def to_tbc(flat):  # (M, C) -> (T, B, C) f32, dropping sequence padding
        return flat.reshape(B, T_pad, C)[:, :T, :].astype(jnp.float32).transpose(1, 0, 2)

    sentence_rep = x.reshape(B, T_pad, C)[:, 0, :].astype(jnp.float32)    # B,C
    if last_state_only:
        inner_states = [to_tbc(x)]
    else:
        inner_states = [to_tbc(s) for s in inner]
    return inner_states, sentence_rep


# ----------------------------------------------------------------------------
# main
# ----------------------------------------------------------------------------

if __name__ == "__main__":
    cfg = dict(
        vocab_size=32,
        padding_idx=1,
        num_layers=2,
        embedding_dim=32,
        ffn_dim=64,
        num_heads=4,
        max_seq_len=16,
        num_segments=2,
    )
    B, T = 2, 8

    key = jax.random.PRNGKey(0)
    pkey, tkey = jax.random.split(key, 2)
    params = init_params(pkey, cfg)

    tokens = jax.random.randint(tkey, (B, T), 2, cfg["vocab_size"], dtype=jnp.int32)
    tokens = tokens.at[1, -2:].set(cfg["padding_idx"])   # give sequence 1 some padding
    segment_labels = jnp.concatenate(
        [jnp.zeros((B, T // 2), jnp.int32), jnp.ones((B, T // 2), jnp.int32)], axis=1
    )

    inner_states, sentence_rep = encoder_forward(params, tokens, segment_labels, cfg)

    sentence_rep = jax.block_until_ready(sentence_rep)
    inner_states = [jax.block_until_ready(s) for s in inner_states]

    assert sentence_rep.shape == (B, cfg["embedding_dim"])
    assert len(inner_states) == cfg["num_layers"] + 1
    assert all(s.shape == (T, B, cfg["embedding_dim"]) for s in inner_states)
    assert bool(jnp.all(jnp.isfinite(sentence_rep)))
    assert all(bool(jnp.all(jnp.isfinite(s))) for s in inner_states)

    print("KERNEL_OK")
</pallas_src>

<mosaic_0001>
module attributes {stable_mosaic.version = 11 : i64} {
  func.func @_embed_combine_kernel(%arg0: i32, %arg1: memref<16x32xf32, #tpu.memory_space<vmem>>, %arg2: memref<16x32xf32, #tpu.memory_space<vmem>>, %arg3: memref<16x32xf32, #tpu.memory_space<vmem>>, %arg4: memref<16x1xf32, #tpu.memory_space<vmem>>, %arg5: memref<16x32xbf16, #tpu.memory_space<vmem>>) attributes {dimension_semantics = [#tpu.dimension_semantics<parallel>], iteration_bounds = array<i64: 1>, scalar_prefetch = 0 : i64, scratch_operands = 0 : i64, tpu.core_type = #tpu.core_type<tc>, window_params = [{transform_indices = @transform_0, window_bounds = array<i64: 16, 32>}, {transform_indices = @transform_1, window_bounds = array<i64: 16, 32>}, {transform_indices = @transform_2, window_bounds = array<i64: 16, 32>}, {transform_indices = @transform_3, window_bounds = array<i64: 16, 1>}, {transform_indices = @transform_4, window_bounds = array<i64: 16, 32>}]} {
    %c0 = arith.constant 0 : index
    %c0_0 = arith.constant 0 : index
    %0 = vector.load %arg1[%c0, %c0_0] : memref<16x32xf32, #tpu.memory_space<vmem>>, vector<16x32xf32>
    %c0_1 = arith.constant 0 : index
    %c0_2 = arith.constant 0 : index
    %1 = vector.load %arg2[%c0_1, %c0_2] : memref<16x32xf32, #tpu.memory_space<vmem>>, vector<16x32xf32>
    %2 = arith.addf %0, %1 : vector<16x32xf32>
    %c0_3 = arith.constant 0 : index
    %c0_4 = arith.constant 0 : index
    %3 = vector.load %arg3[%c0_3, %c0_4] : memref<16x32xf32, #tpu.memory_space<vmem>>, vector<16x32xf32>
    %4 = arith.addf %2, %3 : vector<16x32xf32>
    %c0_5 = arith.constant 0 : index
    %c0_6 = arith.constant 0 : index
    %5 = vector.load %arg4[%c0_5, %c0_6] : memref<16x1xf32, #tpu.memory_space<vmem>>, vector<16x1xf32>
    %6 = vector.broadcast %5 : vector<16x1xf32> to vector<16x32xf32>
    %7 = arith.mulf %4, %6 : vector<16x32xf32>
    %8 = arith.truncf %7 : vector<16x32xf32> to vector<16x32xbf16>
    %c0_7 = arith.constant 0 : index
    %c0_8 = arith.constant 0 : index
    %9 = vector.load %arg5[%c0_7, %c0_8] : memref<16x32xbf16, #tpu.memory_space<vmem>>, vector<16x32xbf16>
    tpu.vector_store %arg5[%c0_7, %c0_8], %8 {strides = array<i32>} : memref<16x32xbf16, #tpu.memory_space<vmem>>, vector<16x32xbf16>,
    return
  }
  func.func @transform_0(%arg0: i32) -> (i32, i32) {
    %c0_i32 = arith.constant 0 : i32
    %c0_i32_0 = arith.constant 0 : i32
    return %arg0, %c0_i32 : i32, i32
  }
  func.func @transform_1(%arg0: i32) -> (i32, i32) {
    %c0_i32 = arith.constant 0 : i32
    %c0_i32_0 = arith.constant 0 : i32
    return %arg0, %c0_i32 : i32, i32
  }
  func.func @transform_2(%arg0: i32) -> (i32, i32) {
    %c0_i32 = arith.constant 0 : i32
    %c0_i32_0 = arith.constant 0 : i32
    return %arg0, %c0_i32 : i32, i32
  }
  func.func @transform_3(%arg0: i32) -> (i32, i32) {
    %c0_i32 = arith.constant 0 : i32
    %c0_i32_0 = arith.constant 0 : i32
    return %arg0, %c0_i32 : i32, i32
  }
  func.func @transform_4(%arg0: i32) -> (i32, i32) {
    %c0_i32 = arith.constant 0 : i32
    %c0_i32_0 = arith.constant 0 : i32
    return %arg0, %c0_i32 : i32, i32
  }
}

</mosaic_0001>

<bundles_post_ra>
// kernel: tpu_custom_call.1
= control target key start
LH: loop header
LB: loop body
LE: loop exit
PB: predicated region body
PF: predicated region fallthrough
CT: control target
= control target key end

     0   :  { %9 = vsyncpa [#allocation3], 0  ;;  %s240_s0 = inlined_call_operand.vmem [shape: f32[16,32], index: 0, kind: input, shape index: {}]   ;;  %s241_s1 = inlined_call_operand.hbm [shape: f32[16,32], index: 1, kind: input, shape index: {}]   ;;  %s242_s2 = inlined_call_operand.hbm [shape: f32[16,32], index: 2, kind: input, shape index: {}]   ;;  %s243_s3 = inlined_call_operand.vmem [shape: f32[16,1], index: 3, kind: input, shape index: {}]   ;;  %s244_s4 = inlined_call_operand.hbm [shape: bf16[16,32], index: 4, kind: output, shape index: {}]  }
   0x1   :  { %10 = vsyncpa [#allocation6], 0 }
   0x2   :  { %11 = vsyncpa [#allocation4], 0  ;;  %s18_s17 = sshll.u32 %s241_s1, 4  ;;  %s186_s18 = smov [#allocation2]   ;;  %s19_s17 = int_to_ptr.hbm [resolvable:$true] %s18_s17 }
   0x3   :  { %s20_s19 = sshll.u32 %s186_s18, 4  ;;  %s31_s22 = sshll.u32 %s242_s2, 4  ;;  %s21_s19 = int_to_ptr.vmem [resolvable:$true] %s20_s19  ;;  %s32_s22 = int_to_ptr.hbm [resolvable:$true] %s31_s22 }
   0x4   :  { %s187_s23 = smov 128   ;;  %s188_s24 = smov 8  }
   0x5   :  { %26 = dma.hbm_to_vmem [thread:$0]  %s19_s17, 256, %s21_s19, [#allocation3], %s187_s23, %s187_s23, %s188_s24  }
   0x6   :  { %s189_s25 = smov [#allocation5]  }
   0x7   :  { %s33_s26 = sshll.u32 %s189_s25, 4  ;;  %s34_s26 = int_to_ptr.vmem [resolvable:$true] %s33_s26 }
   0x8   :  { %39 = dma.hbm_to_vmem [thread:$0]  %s32_s22, 256, %s34_s26, [#allocation6], %s187_s23, %s187_s23, %s188_s24  }
   0x9   :  { %180 = dma.done.wait [#allocation3], 256  }
   0xa   :  { %181 = vsyncadd [#allocation3], 4294967040 }
   0xb   :  { %182 = dma.done.wait [#allocation6], 256  }
   0xc   :  { %183 = vsyncadd [#allocation6], 4294967040  ;;  %v190_v0 = vmov 0   ;;  %v60_v1 = vld [vmem:[%s243_s3] sm:$0xff]  ;;  %v61_v2 = vld [vmem:[%s243_s3 + $0x8] sm:$0xff]  ;;  %vm76_vm0 = vcmask 257024  }
   0xd   :  { %107 = vset.pattern.permute.xlu0 %v190_v0  ;;  %v50_v3 = vld [vmem:[%s240_s0] sm:$0xff]  ;;  %v56_v6 = vld [vmem:[#allocation5] sm:$0xff]  ;;  %v51_v8 = vld [vmem:[%s240_s0 + $0x8] sm:$0xff]  ;;  %s191_s3 = smov [#allocation7]   ;;  %s85_s10 = sshll.u32 %s244_s4, 4  ;;  %s86_s10 = int_to_ptr.hbm [resolvable:$true] %s85_s10 }
   0xe   :  { %64 = vperm.xlu0 %107, %v60_v1   ;;  %v52_v4 = vld [vmem:[#allocation2] sm:$0xff]  ;;  %v53_v9 = vld [vmem:[#allocation2 + $0x8] sm:$0xff]  ;;  %v57_v13 = vld [vmem:[#allocation5 + $0x8] sm:$0xff]  ;;  %s83_s7 = sshll.u32 %s191_s3, 4  ;;  %s192_s0 = smov 64   ;;  %s84_s7 = int_to_ptr.vmem [resolvable:$true] %s83_s7 }
   0xf   :  { %v54_v5 = vadd.f32 %v52_v4, %v50_v3  ;;  %v55_v12 = vadd.f32 %v53_v9, %v51_v8  ;;  %s193_s11 = smov 4  }
  0x11   :  { %v58_v7 = vadd.f32 %v56_v6, %v54_v5  ;;  %v59_v15 = vadd.f32 %v57_v13, %v55_v12 }
  0x16   :  { %69 = vperm.xlu0 %107, %v61_v2  }
  0x80   :  { %v65_v10 = vpop.permute.xlu0 %64 }
  0x81   :  { %v72_v11 = vmul.f32 %v65_v10, %v58_v7 }
  0x83   :  { %v74_v14 = vpack.c.bf16 %v72_v11, %v72_v11 }
  0x85   :  { %77 = vst.msk [vmem:[#allocation7] sm:$0xf] %vm76_vm0, %v74_v14 }
  0x88   :  { %v70_v16 = vpop.permute.xlu0 %69 }
  0x89   :  { %v73_v17 = vmul.f32 %v70_v16, %v59_v15 }
  0x8b   :  { %v75_v18 = vpack.c.bf16 %v73_v17, %v73_v17 }
  0x8d   :  { %78 = vst.msk [vmem:[#allocation7 + $0x4] sm:$0xf] %vm76_vm0, %v75_v18 }
  0x8e   :  { %91 = dma.vmem_to_hbm [thread:$0]  %s84_s7, 128, %s86_s10, [#allocation4], %s192_s0, %s192_s0, %s193_s11  }
  0x8f   :  { %184 = dma.done.wait [#allocation4], 128  }
  0x90   :  { %185 = vsyncadd [#allocation4], 4294967168 }
  0x91   :  { %96 = vsyncpa [#allocation3], 1 }
  0x92   :  { %97 = vsyncpa [#allocation6], 1 }
  0x93   :  { %98 = vsyncpa [#allocation4], 1 }

</bundles_post_ra>
